<compile_context>
chip_gen: v7x
topology: tpu7x:2x2x1
jax: 0.10.0
libtpu: 0.0.40
codegen_flags: <defaults>
</compile_context>

<pallas_src>
import functools

import jax
import jax.numpy as jnp
from jax.experimental import pallas as pl
from jax.experimental.pallas import tpu as pltpu


# ----------------------------------------------------------------------------
# Fused Pallas kernel: (cropped LM head) + classifier + folded biases, per V-tile
# ----------------------------------------------------------------------------
def _fused_head_cls_kernel(emb_ref, w1t_ref, w2_ref, bias_ref, o_ref, *, B, Lc):
    # Per v-tile block:
    #   emb_ref  : (B*Lc, D)  bf16  cropped embeddings (resident across v)
    #   w1t_ref  : (D, tv)    bf16  LM-head weight, pre-transposed (streamed once)
    #   w2_ref   : (N2, Lc)   bf16  classifier weight (contracts over Lc)
    #   bias_ref : (N2, tv)   f32   rowsum(cls_w) ⊗ lm_bias + cls_bias
    #   o_ref    : (B, N2, tv) f32  output block of (B, N2, Vp), V lane-dense
    s = jnp.dot(emb_ref[...], w1t_ref[...],
                preferred_element_type=jnp.float32)            # (B*Lc, tv) on MXU
    s = s.astype(jnp.bfloat16)                                 # bf16 path for 2nd dot
    for b in range(B):                                         # tiny static loop (B small)
        out = jnp.dot(w2_ref[...], s[b * Lc:(b + 1) * Lc, :],
                      preferred_element_type=jnp.float32)      # (N2, tv) on MXU
        o_ref[b, :, :] = (out + bias_ref[...]).astype(o_ref.dtype)


def _choose_vocab_tiling(V, max_tile=1024):
    """Pick a lane-dense V tile and the padded vocab size it divides."""
    padded128 = -(-V // 128) * 128
    tv = min(max_tile, padded128)
    for cand in (1024, 512, 256, 128):
        if cand <= tv:
            tv = cand
            break
    Vp = -(-V // tv) * tv
    return Vp, tv


def _vmem_limit_bytes(B, Lc, D, tv, N2):
    dbl = 2  # Pallas double-buffers each BlockSpec operand
    blocks = dbl * (B * Lc * D * 2        # emb (bf16, resident)
                    + D * tv * 2          # w1t tile (bf16)
                    + N2 * Lc * 2         # classifier weight (bf16)
                    + N2 * tv * 4         # fused bias tile (f32)
                    + B * N2 * tv * 4)    # output tile (f32)
    scratch = B * Lc * tv * (4 + 2)       # f32 logits tile + bf16 copy
    total = blocks + scratch + (4 << 20)
    return int(min(max(total, 32 << 20), 56 << 20))   # safe on v5e/v6e/v7x


def fused_head_classifier(emb_c, w1t, w2, bias2, *, v_real, tv):
    """emb_c: (B, Lc, D) bf16 -> (B, num_labels, v_real) f32, fully fused.

    Equivalent to:
        logits = emb_c @ lm_head_w.T + lm_head_b              # (B, Lc, V)
        out    = einsum('blv,nl->bnv', logits, cls_w) + cls_b[:, None]
    with the LM-head bias folded through the classifier contraction.
    """
    B, Lc, D = emb_c.shape
    N2, H = w2.shape
    assert H == Lc, (
        f"classifier in_features ({H}) must equal cropped length Lc ({Lc})")
    Dw, Vp = w1t.shape
    assert Dw == D and Vp % tv == 0 and bias2.shape == (N2, Vp)
    nv = Vp // tv

    x2d = emb_c.reshape(B * Lc, D)                  # one big M for the first matmul

    kernel = functools.partial(_fused_head_cls_kernel, B=B, Lc=Lc)

    out_nv = pl.pallas_call(
        kernel,
        out_shape=jax.ShapeDtypeStruct((B, N2, Vp), jnp.float32),
        grid=(nv,),
        in_specs=[
            pl.BlockSpec((B * Lc, D), lambda v: (0, 0)),   # resident (fetched once)
            pl.BlockSpec((D, tv), lambda v: (0, v)),       # streamed once over V
            pl.BlockSpec((N2, Lc), lambda v: (0, 0)),      # resident
            pl.BlockSpec((N2, tv), lambda v: (0, v)),      # fused bias tile
        ],
        out_specs=pl.BlockSpec((B, N2, tv), lambda v: (0, 0, v)),
        compiler_params=pltpu.CompilerParams(
            dimension_semantics=("parallel",),
            vmem_limit_bytes=_vmem_limit_bytes(B, Lc, D, tv, N2)),
    )(x2d, w1t, w2, bias2)

    return out_nv[:, :, :v_real]                    # drop padded vocab columns


# ----------------------------------------------------------------------------
# One-time parameter preparation (kept OUT of the per-call jitted path)
# ----------------------------------------------------------------------------
def prepare_params(params):
    w1 = params["lm_head_w"]                        # (V, D)
    b1 = params["lm_head_b"].astype(jnp.float32)    # (V,)
    cls_w = params["cls_w"]                         # (N2, H)
    cls_b = params["cls_b"].astype(jnp.float32)     # (N2,)
    V, D = w1.shape
    N2 = cls_w.shape[0]

    Vp, tv = _choose_vocab_tiling(V)

    w1t = jnp.zeros((D, Vp), jnp.bfloat16)
    w1t = w1t.at[:, :V].set(jnp.transpose(w1).astype(jnp.bfloat16))
    b1p = jnp.zeros((Vp,), jnp.float32).at[:V].set(b1)

    # Folded bias:  cls_w @ (1_Lc ⊗ b1) + cls_b[:, None]
    #             = rowsum(cls_w)[:, None] * b1[None, :] + cls_b[:, None]
    bias2 = (jnp.sum(cls_w.astype(jnp.float32), axis=1)[:, None] * b1p[None, :]
             + cls_b[:, None])                      # (N2, Vp)

    prep = {
        "embedding": params["embedding"].astype(jnp.bfloat16),
        "w1t": w1t,
        "w2": cls_w.astype(jnp.bfloat16),
        "bias2": bias2,
    }
    meta = {"V": int(V), "Vp": int(Vp), "tv": int(tv)}
    return prep, meta


# ----------------------------------------------------------------------------
# Stand-in backbone "model": embedding lookup + LM head -> .logits
# TODO(synk): the real Mamba backbone (recurrent scan) is an external module
#             and is not reproduced here; crop-before-compute is exact only
#             for this per-token stand-in.
# ----------------------------------------------------------------------------
def mamba_for_token_cls(input_ids, prep, *, pad, v_real, tv):
    L = input_ids.shape[1]
    # input_ids[:, 1:] followed by logits[:, pad:-pad] keeps original token
    # columns [1+pad : L-pad]; slice the ids before any compute so the LM head
    # never touches rows that the crop would discard.
    ids_c = input_ids[:, 1 + pad: L - pad]                     # (B, Lc)
    emb_c = jnp.take(prep["embedding"], ids_c, axis=0)         # (B, Lc, D) bf16 gather
    out_nv = fused_head_classifier(emb_c, prep["w1t"], prep["w2"], prep["bias2"],
                                   v_real=v_real, tv=tv)       # (B, N2, V)
    # module returns (B, V, num_labels): transpose only the small result.
    return jnp.transpose(out_nv, (0, 2, 1))


# ----------------------------------------------------------------------------
# Deterministic parameter init + pure-jnp reference (original op order, f32)
# ----------------------------------------------------------------------------
def init_params(key, *, vocab_in, d_model, vocab_out, hidden_size, num_labels):
    k0, k1, k2, k3, k4 = jax.random.split(key, 5)
    return {
        "embedding": jax.random.normal(k0, (vocab_in, d_model), jnp.float32) * 0.02,
        "lm_head_w": jax.random.normal(k1, (vocab_out, d_model), jnp.float32) * 0.02,
        "lm_head_b": jax.random.normal(k2, (vocab_out,), jnp.float32) * 0.01,
        # nn.Linear(hidden_size, num_labels): weight (num_labels, hidden_size)
        "cls_w": jax.random.normal(k3, (num_labels, hidden_size), jnp.float32) * 0.02,
        "cls_b": jax.random.normal(k4, (num_labels,), jnp.float32) * 0.01,
    }


def reference_forward(input_ids, params, *, pad):
    """Pure-jnp reference with the original (uncropped, unfused, f32) op order."""
    ids = input_ids[:, 1:]
    emb = jnp.take(params["embedding"], ids, axis=0)
    logits = jnp.einsum("bld,vd->blv", emb, params["lm_head_w"]) + params["lm_head_b"]
    logits = logits[:, pad:-pad, :]
    logits = jnp.transpose(logits, (0, 2, 1))
    return jnp.einsum("bvh,nh->bvn", logits, params["cls_w"]) + params["cls_b"]


if __name__ == "__main__":
    # Scaled-down shapes consistent with the forward:
    #   original module: hidden_size=768, num_labels=15, pad=(8194-500)//2=3847
    #   scaled down:     hidden_size=8,   num_labels=5,  pad=2
    B = 2
    L = 13            # raw input length; after [:, 1:] -> L' = 12
    PAD = 2           # cropped length Lc = 12 - 2*2 = 8
    HIDDEN = 8        # classifier in_features == Lc
    NUM_LABELS = 5
    VOCAB_IN = 32
    D_MODEL = 16
    VOCAB_OUT = 200   # NOT a multiple of 128: exercises the pad-and-slice path

    key = jax.random.PRNGKey(0)
    k_ids, k_params = jax.random.split(key)
    input_ids = jax.random.randint(k_ids, (B, L), 0, VOCAB_IN, dtype=jnp.int32)
    params = init_params(k_params, vocab_in=VOCAB_IN, d_model=D_MODEL,
                         vocab_out=VOCAB_OUT, hidden_size=HIDDEN,
                         num_labels=NUM_LABELS)

    prep, meta = prepare_params(params)            # one-time: transpose/cast/pad/fold
    fwd = jax.jit(functools.partial(mamba_for_token_cls, pad=PAD,
                                    v_real=meta["V"], tv=meta["tv"]))
    out = fwd(input_ids, prep)
    jax.block_until_ready(out)

    ref = reference_forward(input_ids, params, pad=PAD)
    assert out.shape == (B, VOCAB_OUT, NUM_LABELS), out.shape
    # bf16 MXU inputs on both matmuls (f32 accumulation) vs f32 reference.
    assert jnp.allclose(out, ref, atol=1e-3, rtol=2e-2), "mismatch vs reference"

    print("KERNEL_OK")
</pallas_src>

<mosaic_0001>
module attributes {stable_mosaic.version = 11 : i64} {
  func.func @_fused_head_cls_kernel(%arg0: i32, %arg1: memref<16x16xbf16, #tpu.memory_space<vmem>>, %arg2: memref<16x256xbf16, #tpu.memory_space<vmem>>, %arg3: memref<5x8xbf16, #tpu.memory_space<vmem>>, %arg4: memref<5x256xf32, #tpu.memory_space<vmem>>, %arg5: memref<2x5x256xf32, #tpu.memory_space<vmem>>) attributes {dimension_semantics = [#tpu.dimension_semantics<parallel>], iteration_bounds = array<i64: 1>, scalar_prefetch = 0 : i64, scratch_operands = 0 : i64, tpu.core_type = #tpu.core_type<tc>, window_params = [{pipeline_mode = #tpu.pipeline_mode<synchronous>, transform_indices = @transform_0, window_bounds = array<i64: 16, 16>}, {transform_indices = @transform_1, window_bounds = array<i64: 16, 256>}, {pipeline_mode = #tpu.pipeline_mode<synchronous>, transform_indices = @transform_2, window_bounds = array<i64: 5, 8>}, {transform_indices = @transform_3, window_bounds = array<i64: 5, 256>}, {transform_indices = @transform_4, window_bounds = array<i64: 2, 5, 256>}]} {
    %c0 = arith.constant 0 : index
    %c0_0 = arith.constant 0 : index
    %0 = vector.load %arg1[%c0, %c0_0] : memref<16x16xbf16, #tpu.memory_space<vmem>>, vector<16x16xbf16>
    %c0_1 = arith.constant 0 : index
    %c0_2 = arith.constant 0 : index
    %1 = vector.load %arg2[%c0_1, %c0_2] : memref<16x256xbf16, #tpu.memory_space<vmem>>, vector<16x256xbf16>
    %cst = arith.constant dense<0.000000e+00> : vector<16x256xf32>
    %2 = tpu.matmul %0, %1, %cst {dimension_numbers = #tpu.dot_dimension_numbers<[1], [0], [0], [1], [0, 0, 1, 1], [], []>} : vector<16x16xbf16>, vector<16x256xbf16>, vector<16x256xf32> -> vector<16x256xf32>
    %3 = arith.truncf %2 : vector<16x256xf32> to vector<16x256xbf16>
    %c0_3 = arith.constant 0 : index
    %c0_4 = arith.constant 0 : index
    %4 = vector.load %arg3[%c0_3, %c0_4] : memref<5x8xbf16, #tpu.memory_space<vmem>>, vector<5x8xbf16>
    %5 = vector.extract_strided_slice %3 {offsets = [0, 0], sizes = [8, 256], strides = [1, 1]} : vector<16x256xbf16> to vector<8x256xbf16>
    %cst_5 = arith.constant dense<0.000000e+00> : vector<5x256xf32>
    %6 = tpu.matmul %4, %5, %cst_5 {dimension_numbers = #tpu.dot_dimension_numbers<[1], [0], [0], [1], [0, 0, 1, 1], [], []>} : vector<5x8xbf16>, vector<8x256xbf16>, vector<5x256xf32> -> vector<5x256xf32>
    %c0_6 = arith.constant 0 : index
    %c0_7 = arith.constant 0 : index
    %7 = vector.load %arg4[%c0_6, %c0_7] : memref<5x256xf32, #tpu.memory_space<vmem>>, vector<5x256xf32>
    %8 = arith.addf %6, %7 : vector<5x256xf32>
    %c0_8 = arith.constant 0 : index
    %c0_9 = arith.constant 0 : index
    %c0_10 = arith.constant 0 : index
    %9 = vector.load %arg5[%c0_8, %c0_9, %c0_10] : memref<2x5x256xf32, #tpu.memory_space<vmem>>, vector<1x5x256xf32>
    %10 = vector.shape_cast %9 : vector<1x5x256xf32> to vector<5x256xf32>
    %11 = vector.shape_cast %8 : vector<5x256xf32> to vector<1x5x256xf32>
    tpu.vector_store %arg5[%c0_8, %c0_9, %c0_10], %11 {strides = array<i32>} : memref<2x5x256xf32, #tpu.memory_space<vmem>>, vector<1x5x256xf32>,
    %c0_11 = arith.constant 0 : index
    %c0_12 = arith.constant 0 : index
    %12 = vector.load %arg3[%c0_11, %c0_12] : memref<5x8xbf16, #tpu.memory_space<vmem>>, vector<5x8xbf16>
    %13 = vector.extract_strided_slice %3 {offsets = [8, 0], sizes = [8, 256], strides = [1, 1]} : vector<16x256xbf16> to vector<8x256xbf16>
    %cst_13 = arith.constant dense<0.000000e+00> : vector<5x256xf32>
    %14 = tpu.matmul %12, %13, %cst_13 {dimension_numbers = #tpu.dot_dimension_numbers<[1], [0], [0], [1], [0, 0, 1, 1], [], []>} : vector<5x8xbf16>, vector<8x256xbf16>, vector<5x256xf32> -> vector<5x256xf32>
    %c0_14 = arith.constant 0 : index
    %c0_15 = arith.constant 0 : index
    %15 = vector.load %arg4[%c0_14, %c0_15] : memref<5x256xf32, #tpu.memory_space<vmem>>, vector<5x256xf32>
    %16 = arith.addf %14, %15 : vector<5x256xf32>
    %c1 = arith.constant 1 : index
    %c0_16 = arith.constant 0 : index
    %c0_17 = arith.constant 0 : index
    %17 = vector.load %arg5[%c1, %c0_16, %c0_17] : memref<2x5x256xf32, #tpu.memory_space<vmem>>, vector<1x5x256xf32>
    %18 = vector.shape_cast %17 : vector<1x5x256xf32> to vector<5x256xf32>
    %19 = vector.shape_cast %16 : vector<5x256xf32> to vector<1x5x256xf32>
    tpu.vector_store %arg5[%c1, %c0_16, %c0_17], %19 {strides = array<i32>} : memref<2x5x256xf32, #tpu.memory_space<vmem>>, vector<1x5x256xf32>,
    return
  }
  func.func @transform_0(%arg0: i32) -> (i32, i32) {
    %c0_i32 = arith.constant 0 : i32
    %c0_i32_0 = arith.constant 0 : i32
    %c0_i32_1 = arith.constant 0 : i32
    return %c0_i32, %c0_i32_0 : i32, i32
  }
  func.func @transform_1(%arg0: i32) -> (i32, i32) {
    %c0_i32 = arith.constant 0 : i32
    %c0_i32_0 = arith.constant 0 : i32
    return %c0_i32, %arg0 : i32, i32
  }
  func.func @transform_2(%arg0: i32) -> (i32, i32) {
    %c0_i32 = arith.constant 0 : i32
    %c0_i32_0 = arith.constant 0 : i32
    %c0_i32_1 = arith.constant 0 : i32
    return %c0_i32, %c0_i32_0 : i32, i32
  }
  func.func @transform_3(%arg0: i32) -> (i32, i32) {
    %c0_i32 = arith.constant 0 : i32
    %c0_i32_0 = arith.constant 0 : i32
    return %c0_i32, %arg0 : i32, i32
  }
  func.func @transform_4(%arg0: i32) -> (i32, i32, i32) {
    %c0_i32 = arith.constant 0 : i32
    %c0_i32_0 = arith.constant 0 : i32
    %c0_i32_1 = arith.constant 0 : i32
    return %c0_i32, %c0_i32_0, %arg0 : i32, i32, i32
  }
}

</mosaic_0001>

<bundles_post_ra>
// kernel: mamba_for_token_cls.1
= control target key start
LH: loop header
LB: loop body
LE: loop exit
PB: predicated region body
PF: predicated region fallthrough
CT: control target
= control target key end

     0   :  { %v222_v1 = vmov 0   ;;  %vm37_vm0 = vcmask 130048   ;;  %vm93_vm1 = vcmask 1043456   ;;  %vm89_vm2 = vcmask 64512   ;;  %s287_s1 = inlined_call_operand.vmem [shape: bf16[16,256], index: 1, kind: input, shape index: {}]   ;;  %s288_s0 = inlined_call_operand.vmem [shape: bf16[16,16], index: 0, kind: input, shape index: {}]   ;;  %s289_s2 = inlined_call_operand.vmem [shape: bf16[5,8], index: 2, kind: input, shape index: {}]   ;;  %s290_s3 = inlined_call_operand.vmem [shape: f32[5,256], index: 3, kind: input, shape index: {}]   ;;  %s291_s4 = inlined_call_operand.vmem [shape: f32[2,5,256], index: 4, kind: output, shape index: {}]  }
   0x1   :  { %v218_v0 = vld [vmem:[%s287_s1 + $0x4] ss:$8 sps:$4 sm:$0xff]   ;;  %73 = vmatprep.mubr.bf16.mxu0 %v222_v1  ;;  %132 = vmatprep.mubr.bf16.mxu1 %v222_v1  ;;  %v220_v2 = vld [vmem:[%s287_s1] ss:$8 sps:$4 sm:$0xff]  }
   0x2   :  { %41 = vmatprep.subr.bf16.mxu0 %v218_v0  ;;  %v221_v3 = vld [vmem:[%s288_s0] sm:$0xff]   ;;  %v88_v17 = vld [vmem:[%s290_s3 + $0x8] sm:$0x1f] }
   0x3   :  { %42 = vmatpush1.bf16.msra.mxu0 %v220_v2  ;;  %v86_v14 = vld [vmem:[%s289_s2] sm:$0x7]  ;;  %v145_v22 = vld [vmem:[%s290_s3 + $0x8] sm:$0x1f] }
   0x4   :  { %v143_v15 = vld [vmem:[%s289_s2] sm:$0x7] }
   0x5   :  { %v87_v16 = vld [vmem:[%s290_s3] sm:$0x1f] }
   0x6   :  { %210 = vmatmul.mubr.msk.bf16.vlgmr.msra.gmra.mrb[0].mxu0 %vm37_vm0, %v221_v3  ;;  %v144_v19 = vld [vmem:[%s290_s3] sm:$0x1f] }
   0x7   :  { %191 = vmatprep.mubr.bf16.mxu0 %v222_v1 }
  0xd9   :  { %v75_v4 = vpop.f32.mrb[0].mxu0 }
  0xda   :  { %v77_v5 = vpop.f32.mrb[1].mxu0 }
  0xdb   :  { %v79_v6 = vpop.f32.mrb[2].mxu0 }
  0xdc   :  { %v84_v7 = vpack.c.bf16 %v79_v6, %v75_v4  ;;  %v81_v8 = vpop.f32.mrb[3].mxu0 }
  0xdd   :  { %v85_v9 = vpack.c.bf16 %v81_v8, %v77_v5 }
  0xde   :  { %v148_v10 = vrot.slane %v84_v7, 4  ;;  %v95_v11 = vsel %vm93_vm1, %v84_v7, 0 }
  0xdf   :  { %v149_v12 = vrot.slane %v85_v9, 4  ;;  %211 = vmatprep.subr.msk.bf16.mxu1 %vm93_vm1, %v85_v9 }
  0xe0   :  { %101 = vmatpush1.bf16.msra.mxu1 %v95_v11  ;;  %v154_v13 = vsel %vm93_vm1, %v148_v10, 0 }
  0xe1   :  { %213 = vmatprep.subr.msk.bf16.mxu0 %vm93_vm1, %v149_v12 }
  0xe2   :  { %160 = vmatpush1.bf16.msra.mxu0 %v154_v13 }
  0xe3   :  { %212 = vmatmul.mubr.msk.bf16.vlgmr.msra.gmra.mrb[0].mxu1 %vm89_vm2, %v86_v14 }
  0xe5   :  { %214 = vmatmul.mubr.msk.bf16.vlgmr.msra.gmra.mrb[4].mxu0 %vm89_vm2, %v143_v15 }
 0x1b6   :  { %v134_v18 = vpop.f32.mrb[0].mxu1 }
 0x1b7   :  { %v135_v20 = vadd.f32 %v134_v18, %v87_v16  ;;  %v136_v21 = vpop.f32.mrb[1].mxu1 }
 0x1b8   :  { %v193_v23 = vpop.f32.mrb[4].mxu0  ;;  %v137_v24 = vadd.f32 %v136_v21, %v88_v17  ;;  %v138_v25 = vpop.f32.mrb[2].mxu1 }
 0x1b9   :  { %141 = vst [vmem:[%s291_s4] sm:$0x1f] %v135_v20  ;;  %v194_v26 = vadd.f32 %v193_v23, %v144_v19  ;;  %v195_v27 = vpop.f32.mrb[5].mxu0  ;;  %v139_v28 = vpop.f32.mrb[3].mxu1 }
 0x1ba   :  { %142 = vst [vmem:[%s291_s4 + $0x8] sm:$0x1f] %v137_v24  ;;  %v196_v29 = vadd.f32 %v195_v27, %v145_v22  ;;  %v197_v30 = vpop.f32.mrb[6].mxu0 }
 0x1bb   :  { %215 = vst [vmem:[%s291_s4 + $0x10] sm:$0x1f] %v194_v26  ;;  %v198_v31 = vpop.f32.mrb[7].mxu0 }
 0x1bc   :  { %216 = vst [vmem:[%s291_s4 + $0x18] sm:$0x1f] %v196_v29 }

</bundles_post_ra>
